<compile_context>
chip_gen: v6e
topology: v6e:2x2x1
jax: 0.10.0
libtpu: 0.0.40
codegen_flags: <defaults>
</compile_context>

<pallas_src>
import functools

import jax
import jax.numpy as jnp
from jax.experimental import pallas as pl
from jax.experimental.pallas import tpu as pltpu

_LANES = 128
_TILE_ROWS = 8192                      # (8192, 128) f32 tile = 4 MiB
_VMEM_LIMIT_BYTES = 40 * 1024 * 1024   # headroom for double-buffered in+out


def _poly_cutoff_kernel(r_ref, o_ref, *, p, inv_cut, c0, c1, c2):
    # All constants are Python scalars (no captured tracers). Compute in f32.
    r = r_ref[...].astype(jnp.float32) * inv_cut
    r_p = jax.lax.integer_pow(r, p)                       # r^p, static p
    # 1 - c0*r^p + c1*r^(p+1) - c2*r^(p+2) == 1 + r^p*(-c0 + r*(c1 - c2*r))
    poly = 1.0 + r_p * (-c0 + r * (c1 - c2 * r))
    o_ref[...] = poly.astype(o_ref.dtype)


def _poly_cutoff_jnp(r_flat, *, p, inv_cut, c0, c1, c2):
    # Plain-jnp path for tiny inputs / the <128-element unaligned tail.
    rf = r_flat.astype(jnp.float32) * inv_cut
    r_p = rf ** p
    poly = 1.0 + r_p * (-c0 + rf * (c1 - c2 * rf))
    return poly.astype(r_flat.dtype)


def polynomial_cutoff(r: jax.Array,
                      cutoff_length: float,
                      poly_cut_p_value: int = 6) -> jax.Array:
    """f : (*, 1) -> (*, 1), matching PolynomialCutoff.forward semantics."""
    p = int(poly_cut_p_value)
    c0 = (p + 1.0) * (p + 2.0) / 2.0
    c1 = p * (p + 2.0)
    c2 = p * (p + 1.0) / 2.0
    inv_cut = 1.0 / float(cutoff_length)
    consts = dict(p=p, inv_cut=inv_cut, c0=c0, c1=c1, c2=c2)

    orig_shape = r.shape
    orig_dtype = r.dtype
    n = r.size

    flat = r.reshape(-1)                 # contiguous reshape: free, no copy
    n_main = (n // _LANES) * _LANES      # 128-aligned prefix for the kernel

    if n_main == 0:
        # n < 128 (including n == 0 "no edges"): launch overhead dominates.
        return _poly_cutoff_jnp(flat, **consts).reshape(orig_shape)

    rows = n_main // _LANES
    slab = (flat if n_main == n else flat[:n_main]).reshape(rows, _LANES)

    tile_rows = min(_TILE_ROWS, rows)
    if rows >= 16:
        # Ensure >= 2 grid steps so the "parallel" axis shards across both
        # TensorCores on v7x; keep the tile a multiple of 8 sublanes.
        half = ((pl.cdiv(rows, 2) + 7) // 8) * 8
        tile_rows = min(tile_rows, half)

    grid = (pl.cdiv(rows, tile_rows),)
    kernel = functools.partial(_poly_cutoff_kernel, **consts)

    out_slab = pl.pallas_call(
        kernel,
        out_shape=jax.ShapeDtypeStruct((rows, _LANES), orig_dtype),
        grid=grid,
        in_specs=[pl.BlockSpec((tile_rows, _LANES), lambda i: (i, 0))],
        out_specs=pl.BlockSpec((tile_rows, _LANES), lambda i: (i, 0)),
        compiler_params=pltpu.CompilerParams(
            dimension_semantics=("parallel",),
            vmem_limit_bytes=_VMEM_LIMIT_BYTES),
    )(slab)

    if n_main == n:
        # Aligned fast path: reshape is free, zero extra HBM traffic.
        return out_slab.reshape(orig_shape)

    # Unaligned tail (< 128 elements) in plain jnp, then stitch back together.
    tail = _poly_cutoff_jnp(flat[n_main:], **consts)
    return jnp.concatenate([out_slab.reshape(-1), tail]).reshape(orig_shape)


def _reference(r, cutoff_length, p=6):
    # Same math as the PyTorch forward, in plain JAX.
    rr = r / cutoff_length
    return (1.0
            - (p + 1.0) * (p + 2.0) / 2.0 * rr ** p
            + p * (p + 2.0) * rr ** (p + 1)
            - p * (p + 1.0) / 2.0 * rr ** (p + 2))


if __name__ == "__main__":
    key = jax.random.PRNGKey(0)
    cutoff_length = 5.0

    # Main example: 256 edge distances, shape (256, 1) -> aligned fast path.
    r = jax.random.uniform(key, (256, 1), dtype=jnp.float32,
                           minval=0.0, maxval=cutoff_length)
    out = jax.block_until_ready(polynomial_cutoff(r, cutoff_length, 6))
    assert out.shape == r.shape and out.dtype == r.dtype
    assert jnp.allclose(out, _reference(r, cutoff_length), atol=1e-5, rtol=1e-5)

    # Unaligned edge count (kernel prefix + jnp tail path).
    k2 = jax.random.PRNGKey(1)
    r2 = jax.random.uniform(k2, (200, 1), dtype=jnp.float32,
                            minval=0.0, maxval=cutoff_length)
    out2 = jax.block_until_ready(polynomial_cutoff(r2, cutoff_length, 6))
    assert out2.shape == r2.shape
    assert jnp.allclose(out2, _reference(r2, cutoff_length), atol=1e-5, rtol=1e-5)

    # Larger aligned case exercising the >=2-step parallel grid.
    k3 = jax.random.PRNGKey(2)
    r3 = jax.random.uniform(k3, (4096, 1), dtype=jnp.float32,
                            minval=0.0, maxval=cutoff_length)
    out3 = jax.block_until_ready(polynomial_cutoff(r3, cutoff_length, 6))
    assert jnp.allclose(out3, _reference(r3, cutoff_length), atol=1e-5, rtol=1e-5)

    # Degenerate "no edges" case.
    r0 = jnp.zeros((0, 1), jnp.float32)
    out0 = jax.block_until_ready(polynomial_cutoff(r0, cutoff_length, 6))
    assert out0.shape == (0, 1)

    print("KERNEL_OK")
</pallas_src>

<mosaic_0001>
module attributes {stable_mosaic.version = 11 : i64} {
  func.func @_poly_cutoff_kernel(%arg0: i32, %arg1: memref<2x128xf32, #tpu.memory_space<vmem>>, %arg2: memref<2x128xf32, #tpu.memory_space<vmem>>) attributes {dimension_semantics = [#tpu.dimension_semantics<parallel>], iteration_bounds = array<i64: 1>, scalar_prefetch = 0 : i64, scratch_operands = 0 : i64, tpu.core_type = #tpu.core_type<tc>, window_params = [{transform_indices = @transform_0, window_bounds = array<i64: 2, 128>}, {transform_indices = @transform_1, window_bounds = array<i64: 2, 128>}]} {
    %c0 = arith.constant 0 : index
    %c0_0 = arith.constant 0 : index
    %0 = vector.load %arg1[%c0, %c0_0] : memref<2x128xf32, #tpu.memory_space<vmem>>, vector<2x128xf32>
    %cst = arith.constant 2.000000e-01 : f32
    %1 = vector.broadcast %cst : f32 to vector<2x128xf32>
    %2 = arith.mulf %0, %1 : vector<2x128xf32>
    %3 = arith.mulf %2, %2 : vector<2x128xf32>
    %4 = arith.mulf %3, %3 : vector<2x128xf32>
    %5 = arith.mulf %3, %4 : vector<2x128xf32>
    %cst_1 = arith.constant 2.100000e+01 : f32
    %6 = vector.broadcast %cst_1 : f32 to vector<2x128xf32>
    %7 = arith.mulf %6, %2 : vector<2x128xf32>
    %cst_2 = arith.constant 4.800000e+01 : f32
    %8 = vector.broadcast %cst_2 : f32 to vector<2x128xf32>
    %9 = arith.subf %8, %7 : vector<2x128xf32>
    %10 = arith.mulf %2, %9 : vector<2x128xf32>
    %cst_3 = arith.constant -2.800000e+01 : f32
    %11 = vector.broadcast %cst_3 : f32 to vector<2x128xf32>
    %12 = arith.addf %11, %10 : vector<2x128xf32>
    %13 = arith.mulf %5, %12 : vector<2x128xf32>
    %cst_4 = arith.constant 1.000000e+00 : f32
    %14 = vector.broadcast %cst_4 : f32 to vector<2x128xf32>
    %15 = arith.addf %14, %13 : vector<2x128xf32>
    %c0_5 = arith.constant 0 : index
    %c0_6 = arith.constant 0 : index
    %16 = vector.load %arg2[%c0_5, %c0_6] : memref<2x128xf32, #tpu.memory_space<vmem>>, vector<2x128xf32>
    tpu.vector_store %arg2[%c0_5, %c0_6], %15 {strides = array<i32>} : memref<2x128xf32, #tpu.memory_space<vmem>>, vector<2x128xf32>,
    return
  }
  func.func @transform_0(%arg0: i32) -> (i32, i32) {
    %c0_i32 = arith.constant 0 : i32
    %c0_i32_0 = arith.constant 0 : i32
    return %arg0, %c0_i32 : i32, i32
  }
  func.func @transform_1(%arg0: i32) -> (i32, i32) {
    %c0_i32 = arith.constant 0 : i32
    %c0_i32_0 = arith.constant 0 : i32
    return %arg0, %c0_i32 : i32, i32
  }
}

</mosaic_0001>

<bundles_post_ra>
// kernel: tpu_custom_call.1
= control target key start
LH: loop header
LB: loop body
LE: loop exit
PB: predicated region body
PF: predicated region fallthrough
CT: control target
= control target key end

     0   :  { %6 = vsyncpa [#allocation3], 0  ;;  %s112_s0 = inlined_call_operand.hbm [shape: f32[2,128], index: 0, kind: input, shape index: {}]   ;;  %s113_s1 = inlined_call_operand.hbm [shape: f32[2,128], index: 1, kind: output, shape index: {}]  }
   0x1   :  { %7 = vsyncpa [#allocation4], 0  ;;  %s94_s6 = smov [#allocation2]  }
   0x2   :  { %s14_s7 = sshll.u32 %s94_s6, 4  ;;  %s15_s7 = int_to_ptr.vmem [resolvable:$true] %s14_s7 }
   0x3   :  { %s58_s8 = scalar_lea.vmem %s15_s7, 32  ;;  %p63_p1 = scmp.lt.s32.totalorder %s15_s7, %s15_s7 }
   0x4   :  { %p59_p0 = scmp.ne.s32.totalorder %s15_s7, %s58_s8  ;;  %p64_p2 = scmp.lt.s32.totalorder %s58_s8, %s58_s8 }
   0x6   :  { %p65_p3 = por %p64_p2, %p63_p1 }
   0x8   :  { %p66_p4 = pnand %p65_p3, %p59_p0 }
   0xa   :  { %69 = shalt.err (!%p66_p4)
}
   0xb   :  { %17 = dma.hbm_to_vmem [thread:$0]  %s112_s0, 32, %s15_s7, [#allocation3]  }
   0xc   :  { %90 = dma.done.wait [#allocation3], 32  }
   0xd   :  { %91 = vsyncadd [#allocation3], 4294967264  ;;  %v21_v0 = vld [vmem:[#allocation2] sm:$0x3]  ;;  %s95_s11 = smov [#allocation5]  }
   0xe   :  { %v22_v1 = vmul.f32 0.2, %v21_v0  ;;  %s39_s12 = sshll.u32 %s95_s11, 4  ;;  %s40_s12 = int_to_ptr.vmem [resolvable:$true] %s39_s12 }
   0xf   :  { %s70_s13 = scalar_lea.vmem %s40_s12, 32  ;;  %p75_p6 = scmp.lt.s32.totalorder %s40_s12, %s40_s12 }
  0x10   :  { %v23_v2 = vmul.f32 %v22_v1, %v22_v1  ;;  %v26_v3 = vmul.f32 21.0, %v22_v1  ;;  %p71_p5 = scmp.ne.s32.totalorder %s40_s12, %s70_s13  ;;  %p76_p7 = scmp.lt.s32.totalorder %s70_s13, %s70_s13 }
  0x12   :  { %v24_v4 = vmul.f32 %v23_v2, %v23_v2  ;;  %v27_v5 = vsub.f32 48.0, %v26_v3  ;;  %p77_p8 = por %p76_p7, %p75_p6 }
  0x14   :  { %v25_v6 = vmul.f32 %v24_v4, %v23_v2  ;;  %v28_v7 = vmul.f32 %v27_v5, %v22_v1  ;;  %p78_p9 = pnand %p77_p8, %p71_p5 }
  0x16   :  { %v29_v8 = vadd.f32 -28.0, %v28_v7 }
  0x18   :  { %v30_v9 = vmul.f32 %v29_v8, %v25_v6 }
  0x1a   :  { %v31_v10 = vadd.f32 1.0, %v30_v9 }
  0x1c   :  { %32 = vst [vmem:[#allocation5] sm:$0x3] %v31_v10 }
  0x1d   :  { %81 = shalt.err (!%p78_p9)
}
  0x1e   :  { %42 = dma.vmem_to_hbm [thread:$0]  %s40_s12, 32, %s113_s1, [#allocation4]  }
  0x1f   :  { %92 = dma.done.wait [#allocation4], 32  }
  0x20   :  { %93 = vsyncadd [#allocation4], 4294967264 }
  0x21   :  { %46 = vsyncpa [#allocation3], 1 }
  0x22   :  { %47 = vsyncpa [#allocation4], 1 }

</bundles_post_ra>
